<compile_context>
chip_gen: v5e
topology: v5e:2x2
jax: 0.10.0
libtpu: 0.0.40
codegen_flags: <defaults>
</compile_context>

<pallas_src>
import jax
import jax.numpy as jnp
from jax.experimental import pallas as pl
from jax.experimental.pallas import tpu as pltpu


def _round_up(n, m):
    return ((n + m - 1) // m) * m


def _generator_kernel(x_ref, w_ref, b_ref, o_ref, m_sc, l_sc):
    # x_ref: (tm, d_model)  input row tile (resident across phase/vocab steps)
    # w_ref: (d_model, tn)  weight column tile (streamed)
    # b_ref: (1, tn)        bias column tile
    # o_ref: (tm, tn)       output tile
    # m_sc/l_sc: (tm, 1) f32 running max / running sum(exp) scratch
    phase = pl.program_id(1)
    j = pl.program_id(2)

    @pl.when((phase == 0) & (j == 0))
    def _init():
        m_sc[...] = jnp.full_like(m_sc, -jnp.inf)
        l_sc[...] = jnp.zeros_like(l_sc)

    # MXU matmul: operands stay in their (bf16) dtype; accumulate in f32.
    logits = (
        jnp.dot(x_ref[...], w_ref[...], preferred_element_type=jnp.float32)
        + b_ref[...].astype(jnp.float32)
    )

    @pl.when(phase == 0)
    def _accumulate():
        m_prev = m_sc[...]
        m_new = jnp.maximum(m_prev, jnp.max(logits, axis=-1, keepdims=True))
        l_sc[...] = (l_sc[...] * jnp.exp(m_prev - m_new)
                     + jnp.sum(jnp.exp(logits - m_new), axis=-1, keepdims=True))
        m_sc[...] = m_new

    @pl.when(phase == 1)
    def _write():
        lse = m_sc[...] + jnp.log(l_sc[...])
        o_ref[...] = (logits - lse).astype(o_ref.dtype)


def generator_forward(x, weight_t, bias, *, tm=256, tn=512,
                      operand_dtype=jnp.bfloat16, out_dtype=None):
    """log_softmax(x @ weight_t + bias, axis=-1).

    x:        [batch, seq, d_model]
    weight_t: [d_model, vocab]  (transpose of torch Linear weight)
    bias:     [vocab]
    """
    batch, seq, d_model = x.shape
    vocab = weight_t.shape[1]
    out_dtype = x.dtype if out_dtype is None else out_dtype

    rows = batch * seq
    # Clamp tiles to the (padded) problem size, keep (8, 128) alignment.
    tm = _round_up(min(tm, _round_up(rows, 8)), 8)
    tn = _round_up(min(tn, _round_up(vocab, 128)), 128)
    rows_p = _round_up(rows, tm)
    vocab_p = _round_up(vocab, tn)

    if operand_dtype is not None:
        x = x.astype(operand_dtype)
        weight_t = weight_t.astype(operand_dtype)

    x2d = x.reshape(rows, d_model)
    if rows_p != rows:
        x2d = jnp.pad(x2d, ((0, rows_p - rows), (0, 0)))
    w2d = weight_t
    b2d = bias.astype(jnp.float32).reshape(1, vocab)
    if vocab_p != vocab:
        # Padded vocab columns get a hugely negative bias so exp() underflows
        # to 0 and they never perturb the logsumexp; sliced off below.
        w2d = jnp.pad(w2d, ((0, 0), (0, vocab_p - vocab)))
        b2d = jnp.pad(b2d, ((0, 0), (0, vocab_p - vocab)), constant_values=-1e30)

    grid = (rows_p // tm, 2, vocab_p // tn)

    # Scoped-VMEM budget: double-buffered tiles + headroom, capped at 48 MiB
    # so it is safe on v7x's 64 MiB physical VMEM as well as v5e/v6e.
    op_b = jnp.dtype(x2d.dtype).itemsize
    out_b = jnp.dtype(out_dtype).itemsize
    est = 2 * (tm * d_model * op_b        # x tile
               + d_model * tn * op_b      # weight tile
               + tn * 4                   # bias tile
               + tm * tn * out_b)         # output tile
    vmem_limit = int(min(max(3 * est, 32 * 1024 * 1024), 48 * 1024 * 1024))

    out2d = pl.pallas_call(
        _generator_kernel,
        out_shape=jax.ShapeDtypeStruct((rows_p, vocab_p), out_dtype),
        grid_spec=pltpu.PrefetchScalarGridSpec(
            num_scalar_prefetch=0,
            grid=grid,
            in_specs=[
                pl.BlockSpec((tm, d_model), lambda i, p, j: (i, 0)),  # x rows resident
                pl.BlockSpec((d_model, tn), lambda i, p, j: (0, j)),  # weight cols stream
                pl.BlockSpec((1, tn), lambda i, p, j: (0, j)),        # bias cols stream
            ],
            # Phase 0 parks on block (i, 0) (never written there); phase 1
            # visits (i, j) and writes each block exactly once before writeback.
            out_specs=pl.BlockSpec((tm, tn), lambda i, p, j: (i, j * p)),
            scratch_shapes=[
                pltpu.VMEM((tm, 1), jnp.float32),  # running max
                pltpu.VMEM((tm, 1), jnp.float32),  # running sum(exp)
            ],
        ),
        compiler_params=pltpu.CompilerParams(
            dimension_semantics=("parallel", "arbitrary", "arbitrary"),
            vmem_limit_bytes=vmem_limit,
        ),
    )(x2d, w2d, b2d)

    return out2d[:rows, :vocab].reshape(batch, seq, vocab)


def _reference(x, weight_t, bias, operand_dtype=jnp.bfloat16):
    """Pure-JAX reference consistent with the kernel's operand dtype."""
    if operand_dtype is not None:
        x = x.astype(operand_dtype)
        weight_t = weight_t.astype(operand_dtype)
    logits = (jnp.dot(x.astype(jnp.float32), weight_t.astype(jnp.float32))
              + bias.astype(jnp.float32))
    return jax.nn.log_softmax(logits, axis=-1)


if __name__ == "__main__":
    key = jax.random.PRNGKey(0)
    k1, k2, k3, k4, k5, k6 = jax.random.split(key, 6)

    # --- Test 1: small shapes, single tile path (defaults) -----------------
    batch, seq, d_model, vocab = 2, 8, 32, 128
    bound = 1.0 / (d_model ** 0.5)
    x = jax.random.normal(k1, (batch, seq, d_model), dtype=jnp.float32)
    weight_t = jax.random.uniform(k2, (d_model, vocab),
                                  minval=-bound, maxval=bound, dtype=jnp.float32)
    bias = jax.random.uniform(k3, (vocab,),
                              minval=-bound, maxval=bound, dtype=jnp.float32)

    out = generator_forward(x, weight_t, bias)
    jax.block_until_ready(out)
    ref = _reference(x, weight_t, bias)
    assert out.shape == (batch, seq, vocab)
    assert jnp.max(jnp.abs(out.astype(jnp.float32) - ref)) < 2e-3

    # --- Test 2: multi row/vocab tiles + row & vocab padding ----------------
    batch2, seq2, d_model2, vocab2 = 2, 7, 32, 200
    bound2 = 1.0 / (d_model2 ** 0.5)
    x2 = jax.random.normal(k4, (batch2, seq2, d_model2), dtype=jnp.float32)
    w2 = jax.random.uniform(k5, (d_model2, vocab2),
                            minval=-bound2, maxval=bound2, dtype=jnp.float32)
    b2 = jax.random.uniform(k6, (vocab2,),
                            minval=-bound2, maxval=bound2, dtype=jnp.float32)

    out2 = generator_forward(x2, w2, b2, tm=8, tn=128)  # force tiled/padded path
    jax.block_until_ready(out2)
    ref2 = _reference(x2, w2, b2)
    assert out2.shape == (batch2, seq2, vocab2)
    assert jnp.max(jnp.abs(out2.astype(jnp.float32) - ref2)) < 2e-3

    print("KERNEL_OK")
</pallas_src>

<mosaic_0001>
module attributes {stable_mosaic.version = 11 : i64} {
  func.func @_generator_kernel(%arg0: i32, %arg1: i32, %arg2: i32, %arg3: memref<16x32xbf16, #tpu.memory_space<vmem>>, %arg4: memref<32x128xbf16, #tpu.memory_space<vmem>>, %arg5: memref<1x128xf32, #tpu.memory_space<vmem>>, %arg6: memref<16x128xf32, #tpu.memory_space<vmem>>, %arg7: memref<16x1xf32, #tpu.memory_space<vmem>>, %arg8: memref<16x1xf32, #tpu.memory_space<vmem>>) attributes {dimension_semantics = [#tpu.dimension_semantics<parallel>, #tpu.dimension_semantics<arbitrary>, #tpu.dimension_semantics<arbitrary>], iteration_bounds = array<i64: 1, 2, 1>, scalar_prefetch = 0 : i64, scratch_operands = 2 : i64, tpu.core_type = #tpu.core_type<tc>, window_params = [{transform_indices = @transform_0, window_bounds = array<i64: 16, 32>}, {transform_indices = @transform_1, window_bounds = array<i64: 32, 128>}, {transform_indices = @transform_2, window_bounds = array<i64: 1, 128>}, {transform_indices = @transform_3, window_bounds = array<i64: 16, 128>}]} {
    %c0_i32 = arith.constant 0 : i32
    %0 = arith.cmpi eq, %arg1, %c0_i32 : i32
    %c0_i32_0 = arith.constant 0 : i32
    %1 = arith.cmpi eq, %arg2, %c0_i32_0 : i32
    %2 = arith.andi %0, %1 : i1
    %3 = arith.extui %2 : i1 to i32
    %c0_i32_1 = arith.constant 0 : i32
    %4 = arith.cmpi ne, %3, %c0_i32_1 : i32
    scf.if %4 {
      %cst_10 = arith.constant 0xFF800000 : f32
      %17 = vector.broadcast %cst_10 : f32 to vector<16x1xf32>
      %c0_11 = arith.constant 0 : index
      %c0_12 = arith.constant 0 : index
      %18 = vector.load %arg7[%c0_11, %c0_12] : memref<16x1xf32, #tpu.memory_space<vmem>>, vector<16x1xf32>
      tpu.vector_store %arg7[%c0_11, %c0_12], %17 {strides = array<i32>} : memref<16x1xf32, #tpu.memory_space<vmem>>, vector<16x1xf32>,
      %cst_13 = arith.constant 0.000000e+00 : f32
      %19 = vector.broadcast %cst_13 : f32 to vector<16x1xf32>
      %c0_14 = arith.constant 0 : index
      %c0_15 = arith.constant 0 : index
      %20 = vector.load %arg8[%c0_14, %c0_15] : memref<16x1xf32, #tpu.memory_space<vmem>>, vector<16x1xf32>
      tpu.vector_store %arg8[%c0_14, %c0_15], %19 {strides = array<i32>} : memref<16x1xf32, #tpu.memory_space<vmem>>, vector<16x1xf32>,
    } else {
    }
    %c0 = arith.constant 0 : index
    %c0_2 = arith.constant 0 : index
    %5 = vector.load %arg3[%c0, %c0_2] : memref<16x32xbf16, #tpu.memory_space<vmem>>, vector<16x32xbf16>
    %c0_3 = arith.constant 0 : index
    %c0_4 = arith.constant 0 : index
    %6 = vector.load %arg4[%c0_3, %c0_4] : memref<32x128xbf16, #tpu.memory_space<vmem>>, vector<32x128xbf16>
    %cst = arith.constant dense<0.000000e+00> : vector<16x128xf32>
    %7 = tpu.matmul %5, %6, %cst {dimension_numbers = #tpu.dot_dimension_numbers<[1], [0], [0], [1], [0, 0, 1, 1], [], []>} : vector<16x32xbf16>, vector<32x128xbf16>, vector<16x128xf32> -> vector<16x128xf32>
    %c0_5 = arith.constant 0 : index
    %c0_6 = arith.constant 0 : index
    %8 = vector.load %arg5[%c0_5, %c0_6] : memref<1x128xf32, #tpu.memory_space<vmem>>, vector<1x128xf32>
    %9 = vector.broadcast %8 : vector<1x128xf32> to vector<16x128xf32>
    %10 = arith.addf %7, %9 : vector<16x128xf32>
    %c0_i32_7 = arith.constant 0 : i32
    %11 = arith.cmpi eq, %arg1, %c0_i32_7 : i32
    %12 = arith.extui %11 : i1 to i32
    %c0_i32_8 = arith.constant 0 : i32
    %13 = arith.cmpi ne, %12, %c0_i32_8 : i32
    scf.if %13 {
      %c0_10 = arith.constant 0 : index
      %c0_11 = arith.constant 0 : index
      %17 = vector.load %arg7[%c0_10, %c0_11] : memref<16x1xf32, #tpu.memory_space<vmem>>, vector<16x1xf32>
      %cst_12 = arith.constant dense<0xFF800000> : vector<16xf32>
      %18 = vector.multi_reduction <maximumf>, %10, %cst_12 [1] : vector<16x128xf32> to vector<16xf32>
      %19 = vector.shape_cast %18 : vector<16xf32> to vector<16x1xf32>
      %20 = arith.maximumf %17, %19 : vector<16x1xf32>
      %c0_13 = arith.constant 0 : index
      %c0_14 = arith.constant 0 : index
      %21 = vector.load %arg8[%c0_13, %c0_14] : memref<16x1xf32, #tpu.memory_space<vmem>>, vector<16x1xf32>
      %22 = arith.subf %17, %20 : vector<16x1xf32>
      %23 = math.exp %22 : vector<16x1xf32>
      %24 = arith.mulf %21, %23 : vector<16x1xf32>
      %25 = vector.broadcast %20 : vector<16x1xf32> to vector<16x128xf32>
      %26 = arith.subf %10, %25 : vector<16x128xf32>
      %27 = math.exp %26 : vector<16x128xf32>
      %cst_15 = arith.constant dense<0.000000e+00> : vector<16xf32>
      %28 = vector.multi_reduction <add>, %27, %cst_15 [1] : vector<16x128xf32> to vector<16xf32>
      %29 = vector.shape_cast %28 : vector<16xf32> to vector<16x1xf32>
      %30 = arith.addf %24, %29 : vector<16x1xf32>
      %c0_16 = arith.constant 0 : index
      %c0_17 = arith.constant 0 : index
      %31 = vector.load %arg8[%c0_16, %c0_17] : memref<16x1xf32, #tpu.memory_space<vmem>>, vector<16x1xf32>
      tpu.vector_store %arg8[%c0_16, %c0_17], %30 {strides = array<i32>} : memref<16x1xf32, #tpu.memory_space<vmem>>, vector<16x1xf32>,
      %c0_18 = arith.constant 0 : index
      %c0_19 = arith.constant 0 : index
      %32 = vector.load %arg7[%c0_18, %c0_19] : memref<16x1xf32, #tpu.memory_space<vmem>>, vector<16x1xf32>
      tpu.vector_store %arg7[%c0_18, %c0_19], %20 {strides = array<i32>} : memref<16x1xf32, #tpu.memory_space<vmem>>, vector<16x1xf32>,
    } else {
    }
    %c1_i32 = arith.constant 1 : i32
    %14 = arith.cmpi eq, %arg1, %c1_i32 : i32
    %15 = arith.extui %14 : i1 to i32
    %c0_i32_9 = arith.constant 0 : i32
    %16 = arith.cmpi ne, %15, %c0_i32_9 : i32
    scf.if %16 {
      %c0_10 = arith.constant 0 : index
      %c0_11 = arith.constant 0 : index
      %17 = vector.load %arg7[%c0_10, %c0_11] : memref<16x1xf32, #tpu.memory_space<vmem>>, vector<16x1xf32>
      %c0_12 = arith.constant 0 : index
      %c0_13 = arith.constant 0 : index
      %18 = vector.load %arg8[%c0_12, %c0_13] : memref<16x1xf32, #tpu.memory_space<vmem>>, vector<16x1xf32>
      %19 = math.log %18 : vector<16x1xf32>
      %20 = arith.addf %17, %19 : vector<16x1xf32>
      %21 = vector.broadcast %20 : vector<16x1xf32> to vector<16x128xf32>
      %22 = arith.subf %10, %21 : vector<16x128xf32>
      %c0_14 = arith.constant 0 : index
      %c0_15 = arith.constant 0 : index
      %23 = vector.load %arg6[%c0_14, %c0_15] : memref<16x128xf32, #tpu.memory_space<vmem>>, vector<16x128xf32>
      tpu.vector_store %arg6[%c0_14, %c0_15], %22 {strides = array<i32>} : memref<16x128xf32, #tpu.memory_space<vmem>>, vector<16x128xf32>,
    } else {
    }
    return
  }
  func.func @transform_0(%arg0: i32, %arg1: i32, %arg2: i32) -> (i32, i32) {
    %c0_i32 = arith.constant 0 : i32
    %c0_i32_0 = arith.constant 0 : i32
    return %arg0, %c0_i32 : i32, i32
  }
  func.func @transform_1(%arg0: i32, %arg1: i32, %arg2: i32) -> (i32, i32) {
    %c0_i32 = arith.constant 0 : i32
    %c0_i32_0 = arith.constant 0 : i32
    return %c0_i32, %arg2 : i32, i32
  }
  func.func @transform_2(%arg0: i32, %arg1: i32, %arg2: i32) -> (i32, i32) {
    %c0_i32 = arith.constant 0 : i32
    %c0_i32_0 = arith.constant 0 : i32
    return %c0_i32, %arg2 : i32, i32
  }
  func.func @transform_3(%arg0: i32, %arg1: i32, %arg2: i32) -> (i32, i32) {
    %0 = arith.muli %arg2, %arg1 : i32
    %c0_i32 = arith.constant 0 : i32
    return %arg0, %0 : i32, i32
  }
}

</mosaic_0001>

<bundles_post_ra>
// kernel: tpu_custom_call.1
= control target key start
LH: loop header
LB: loop body
LE: loop exit
PB: predicated region body
PF: predicated region fallthrough
CT: control target
= control target key end

     0   :  { %8 = vsyncpa [#allocation5], 0  ;;  %s848_s0 = inlined_call_operand.hbm [shape: bf16[16,32], index: 0, kind: input, shape index: {}]   ;;  %s849_s1 = inlined_call_operand.hbm [shape: bf16[32,128], index: 1, kind: input, shape index: {}]   ;;  %s850_s2 = inlined_call_operand.vmem [shape: f32[1,128], index: 2, kind: input, shape index: {}]   ;;  %s851_s3 = inlined_call_operand.hbm [shape: f32[16,128], index: 3, kind: output, shape index: {}]  }
   0x1   :  { %9 = vsyncpa [#allocation8], 0 }
   0x2   :  { %10 = vsyncpa [#allocation6], 0 }
   0x3   :  { %12 = vsyncpa [#allocation6 + $0x1], 0  ;;  %s759_s12 = smov 0   ;;  %s761_s13 = smov 0  }
   0x4   :  { %s763_s14 = smov 0  }
   0x5 LB: > { %s490_s15 = sadd.s32 4294967295, %s726_s14   ;;  %s491_s16 = sadd.s32 4294967294, %s726_s14   ;;  %s726_s14 = sphi %s763_s14, %s18_s14   ;;  %s722_s13 = sphi %s761_s13, %s855_s13   ;;  %s718_s12 = sphi %s759_s12, %s854_s12  }
   0x6   : > { %s33_s17 = sadd.s32 1, %s722_s13  ;;  %p492_p0 = scmp.ge.s32.totalorder %s726_s14, 1 }
   0x7   : > { %p35_p1 = scmp.ge.s32.totalorder %s33_s17, 2  ;;  %p150_p2 = scmp.lt.s32.totalorder %s726_s14, 3 }
   0x8   : > { %p781_p3 = scmp.eq.s32.totalorder %s490_s15, 0  ;;  %s164_s22 = sshll.u32 %s848_s0, 4  ;;  %s165_s22 = int_to_ptr.hbm [resolvable:$true] %s164_s22 }
   0x9   : > { %s857_s17 = smov (%p35_p1, %s33_s17), 0  ;;  %p787_p4 = pnand %p492_p0, %p150_p2 }
   0xa   : > { %s728_s23 = smov [#allocation4]   ;;  %s180_s27 = sshll.u32 %s849_s1, 4  ;;  %s181_s27 = int_to_ptr.hbm [resolvable:$true] %s180_s27 }
   0xb   : > { %p535_p5 = pneg %p787_p4  ;;  %s166_s24 = sshll.u32 %s728_s23, 4  ;;  %s167_s24 = int_to_ptr.vmem [resolvable:$true] %s166_s24 }
   0xc   : > { %s729_s28 = smov 64   ;;  %s730_s29 = smov 4  }
   0xd   : > { %p536_p6 = pnand %p781_p3, %p535_p5  ;;  %s731_s30 = smov [#allocation7]  }
   0xe   : > { %s182_s4 = sshll.u32 %s731_s30, 4  ;;  %204 = sbr.rel (%p787_p4) target bundleno = 692 (0x2b4), region = 32  ;;  %s183_s4 = int_to_ptr.vmem [resolvable:$true] %s182_s4 }
   0xf   : > { %538 = dma.hbm_to_vmem [thread:$0]  (!%p536_p6), %s165_s22, 128, %s167_s24, [#allocation5], %s729_s28, %s729_s28, %s730_s29  }
  0x10   : > { %541 = dma.hbm_to_vmem [thread:$0]  (!%p536_p6), %s181_s27, 256, %s183_s4, [#allocation8], %s729_s28, %s729_s28, %s730_s29  }
  0x13   : > { %705 = dma.done.wait (%p781_p3), [#allocation5], 128  }
  0x14   : > { %707 = vsyncadd (%p781_p3), [#allocation5], 4294967168 }
  0x15   : > { %709 = dma.done.wait (%p781_p3), [#allocation8], 256  }
  0x16   : > { %711 = vsyncadd (%p781_p3), [#allocation8], 4294967040  ;;  %p239_p7 = scmp.eq.s32.totalorder %s718_s12, 0 }
  0x17   : > { %vm245_vm0 = vcmask (%p239_p7), 7168   ;;  %v732_v0 = vmov (%p239_p7), -inf   ;;  %v733_v1 = vmov (%p239_p7), 0.0  }
  0x18   : > { %244 = sbr.rel (!%p239_p7) target bundleno = 29 (0x1d), region = 44  ;;  %246 = vst.msk [vmem:[#allocation2] sm:$0xff] (%p239_p7), %vm245_vm0, %v732_v0 }
  0x19   : > { %247 = vst.msk [vmem:[#allocation2 + $0x8] sm:$0xff] (%p239_p7), %vm245_vm0, %v732_v0 }
  0x1a   : > { %248 = vst.msk [vmem:[#allocation3] sm:$0xff] (%p239_p7), %vm245_vm0, %v733_v1 }
  0x1b   : > { %249 = vst.msk [vmem:[#allocation3 + $0x8] sm:$0xff] (%p239_p7), %vm245_vm0, %v733_v1 }
  0x1d PF: > { %v522_v2 = vld [vmem:[#allocation7 + $0x8] sm:$0xff]  ;;  %v521_v3 = vld [vmem:[#allocation7] sm:$0xff]  ;;  %v520_v4 = vld [vmem:[#allocation4] sm:$0xff]  ;;  %vm277_vm1 = vcmask 261120   ;;  %p513_p8 = scmp.ne.s32.totalorder %s718_s12, 0 }
  0x1e   : > { %287 = vmatpush.bf16.msra.mxu0 %v522_v2  ;;  %v588_v5 = vld [vmem:[%s850_s2] ss:$0 sm:$0xff] }
  0x22   : > { %288 = vmatpush.bf16.msra.mxu0 %v521_v3 }
  0x25   : > { %512 = vmatmul.msk.bf16.vlgmr.msra.gmra.mxu0 %vm277_vm1, %v520_v4 }
  0xa2   : > { %v290_v6 = vpop.f32.mrf.mxu0 }
  0xa3   : > { %v815_v7 = vadd.f32 %v588_v5, %v290_v6 }
  0xa7   : > { %297 = sbr.rel (%p513_p8) target bundleno = 543 (0x21f), region = 48 }
  0xaa   : > { %v292_v8 = vpop.f32.mrf.mxu0 }
  0xab   : > { %v817_v9 = vadd.f32 %v588_v5, %v292_v8 }
  0xac   : > { %300 = vmax.xlane.f32.xlu0 %v815_v7  ;;  %v734_v10 = vmov 0   ;;  %v298_v11 = vld [vmem:[#allocation2] sm:$0xff]  ;;  %vm338_vm2 = vcmask 7168   ;;  %v299_v15 = vld [vmem:[#allocation2 + $0x8] sm:$0xff]  ;;  %v306_v30 = vld [vmem:[#allocation3] sm:$0xff] }
  0xad   : > { %589 = vset.pattern.permute.xlu1 %v734_v10  ;;  %590 = vset.pattern.permute.xlu0 %v734_v10  ;;  %v307_v35 = vld [vmem:[#allocation3 + $0x8] sm:$0xff] }
  0xb4   : > { %302 = vmax.xlane.f32.xlu0 %v817_v9 }
 0x11f   : > { %v301_v12 = vpop.xlane.xlu0 %300 }
 0x120   : > { %v304_v13 = vmax.f32 %v298_v11, %v301_v12 }
 0x122   : > { %v308_v14 = vsub.f32 %v298_v11, %v304_v13  ;;  %341 = vst.msk [vmem:[#allocation2] sm:$0xff] %vm338_vm2, %v304_v13  ;;  %318 = vperm.xlu1 %589, %v304_v13  }
 0x124   : > { %v310_v27 = vmul.f32 1.442695, %v308_v14 }
 0x127   : > { %v303_v16 = vpop.xlane.xlu0 %302 }
 0x128   : > { %v305_v17 = vmax.f32 %v299_v15, %v303_v16 }
 0x12a   : > { %v309_v18 = vsub.f32 %v299_v15, %v305_v17  ;;  %342 = vst.msk [vmem:[#allocation2 + $0x8] sm:$0xff] %vm338_vm2, %v305_v17  ;;  %323 = vperm.xlu1 %589, %v305_v17  }
 0x12c   : > { %v312_v28 = vmul.f32 1.442695, %v309_v18 }
 0x194   : > { %v319_v19 = vpop.permute.xlu1 %318 }
 0x195   : > { %v326_v20 = vsub.f32 %v815_v7, %v319_v19 }
 0x197   : > { %v328_v21 = vmul.f32 1.442695, %v326_v20 }
 0x199   : > { %591 = vpow2.f32 %v328_v21 }
 0x19c   : > { %v324_v22 = vpop.permute.xlu1 %323 }
 0x19d   : > { %v327_v23 = vsub.f32 %v817_v9, %v324_v22 }
 0x19f   : > { %v592_v24 = vpop.eup %591  ;;  %v330_v25 = vmul.f32 1.442695, %v327_v23 }
 0x1a0   : > { %332 = vadd.xlane.f32.xlu2 %v592_v24 }
 0x1a1   : > { %593 = vpow2.f32 %v330_v25 }
 0x1a2   : > { %595 = vpow2.f32 %v310_v27 }
 0x1a3   : > { %597 = vpow2.f32 %v312_v28 }
 0x1a7   : > { %v594_v26 = vpop.eup %593 }
 0x1a8   : > { %334 = vadd.xlane.f32.xlu2 %v594_v26  ;;  %v596_v29 = vpop.eup %595 }
 0x1a9   : > { %v314_v31 = vmul.f32 %v596_v29, %v306_v30  ;;  %v598_v34 = vpop.eup %597 }
 0x1aa   : > { %v315_v36 = vmul.f32 %v598_v34, %v307_v35 }
 0x213   : > { %v333_v32 = vpop.xlane.xlu2 %332 }
 0x214   : > { %v336_v33 = vadd.f32 %v333_v32, %v314_v31 }
 0x216   : > { %339 = vst.msk [vmem:[#allocation3] sm:$0xff] %vm338_vm2, %v336_v33 }
 0x21b   : > { %v335_v37 = vpop.xlane.xlu2 %334 }
 0x21c   : > { %v337_v38 = vadd.f32 %v335_v37, %v315_v36 }
 0x21e   : > { %340 = vst.msk [vmem:[#allocation3 + $0x8] sm:$0xff] %vm338_vm2, %v337_v38 }
 0x21f PF: > { %p514_p9 = scmp.ne.s32.totalorder %s718_s12, 1 }
 0x221   : > { %346 = sbr.rel (%p514_p9) target bundleno = 688 (0x2b0), region = 52 }
 0x226   : > { %v349_v39 = vld [vmem:[#allocation3] sm:$0xff]  ;;  %v735_v40 = vmov 0   ;;  %v350_v41 = vld [vmem:[#allocation3 + $0x8] sm:$0xff]  ;;  %v347_v43 = vld [vmem:[#allocation2] sm:$0xff] }
 0x227   : > { %599 = vset.pattern.permute.xlu0 %v735_v40  ;;  %600 = vlog2.f32 %v349_v39  ;;  %v348_v48 = vld [vmem:[#allocation2 + $0x8] sm:$0xff] }
 0x228   : > { %602 = vlog2.f32 %v350_v41 }
 0x22d   : > { %v601_v42 = vpop.eup %600 }
 0x22e   : > { %v352_v44 = vmul.f32 0.6931472, %v601_v42  ;;  %v603_v45 = vpop.eup %602 }
 0x22f   : > { %v354_v47 = vmul.f32 0.6931472, %v603_v45 }
 0x230   : > { %v355_v46 = vadd.f32 %v352_v44, %v347_v43 }
 0x231   : > { %v356_v49 = vadd.f32 %v354_v47, %v348_v48 }
 0x232   : > { %359 = vperm.xlu0 %599, %v355_v46  }
 0x23a   : > { %364 = vperm.xlu0 %599, %v356_v49  }
 0x2a4   : > { %v360_v50 = vpop.permute.xlu0 %359 }
 0x2a5   : > { %v367_v51 = vsub.f32 %v815_v7, %v360_v50 }
 0x2a7   : > { %369 = vst [vmem:[#allocation9] sm:$0xff] %v367_v51 }
 0x2ac   : > { %v365_v52 = vpop.permute.xlu0 %364 }
 0x2ad   : > { %v368_v53 = vsub.f32 %v817_v9, %v365_v52 }
 0x2af   : > { %370 = vst [vmem:[#allocation9 + $0x8] sm:$0xff] %v368_v53 }
 0x2b0 PF: > { %p550_p10 = scmp.eq.s32.totalorder %s490_s15, 1  ;;  %s388_s9 = sshll.u32 %s851_s3, 4  ;;  %s389_s9 = int_to_ptr.hbm [resolvable:$true] %s388_s9 }
 0x2b1   : > { %s736_s10 = smov [#allocation9]   ;;  %s737_s12 = smov 128  }
 0x2b2   : > { %s386_s11 = sshll.u32 %s736_s10, 4  ;;  %s738_s18 = smov 8   ;;  %s387_s11 = int_to_ptr.vmem [resolvable:$true] %s386_s11 }
 0x2b3   : > { %532 = dma.vmem_to_hbm [thread:$0]  (%p550_p10), %s387_s11, 256, %s389_s9, [#allocation6], %s737_s12, %s737_s12, %s738_s18  }
 0x2b4 PF: > { %p551_p11 = scmp.ge.s32.totalorder %s726_s14, 2  ;;  %p552_p12 = scmp.eq.s32.totalorder %s491_s16, 1 }
 0x2b6   : > { %p543_p13 = pnand %p552_p12, %p551_p11 }
 0x2b8   : > { %p544_p0 = pneg %p543_p13 }
 0x2ba   : > { %713 = dma.done.wait (%p544_p0), [#allocation6], 256  }
 0x2bb   : > { %715 = vsyncadd (%p544_p0), [#allocation6], 4294967040  ;;  %s18_s14 = sadd.s32 1, %s726_s14   ;;  %s854_s12 = smov %s722_s13 }
 0x2bc   : > { %p15_p1 = scmp.ge.s32.totalorder %s18_s14, 4   ;;  %s855_s13 = smov %s857_s17 }
 0x2be   :  { %17 = sbr.rel (!%p15_p1) target bundleno = 5 (0x5), region = 90 }
 0x2c3   :  { %410 = vsyncpa [#allocation5], 1 }
 0x2c4   :  { %412 = vsyncpa [#allocation5 + $0x1], 1 }
 0x2c5   :  { %413 = vsyncpa [#allocation8], 1 }
 0x2c6   :  { %414 = vsyncpa [#allocation6], 1 }
 0x2c7   :  { %416 = vsyncpa [#allocation6 + $0x1], 1 }

</bundles_post_ra>
